<compile_context>
chip_gen: v7x
topology: tpu7x:2x2x1
jax: 0.10.0
libtpu: 0.0.40
codegen_flags: <defaults>
</compile_context>

<pallas_src>
import functools

import jax
import jax.numpy as jnp
from jax import lax
from jax.experimental import pallas as pl
from jax.experimental.pallas import tpu as pltpu


_LANE = 128
_TARGET_BLOCK_BYTES = 4 << 20        # ~4 MiB per input block (review: 2-4 MiB)
_MAX_LANE_TILE = 32768               # review: remove the old 4096-lane cap
_VMEM_LIMIT_BYTES = 32 << 20         # explicit scope: raises v5e's 16 MiB default,
                                     # == default on v6e/v7x, safe on all gens
_SINGLE_PASS_MAX_BYTES = 4 << 20     # f32 working-set threshold for the 1-pass path


def _round_up(a, b):
    return -(-a // b) * b


def _pick_tiles(nc, hw, itemsize, target_bytes=_TARGET_BLOCK_BYTES):
    """Pick a (rows, lanes) block for the (N*C, H*W) view.

    lanes: multiple of 128, preferring an exact divisor of hw (no padding);
    rows : multiple of the sublane packing (8 for f32, 16 for bf16) or == nc.
    Blocks are ~target_bytes so the ~0.35 us/step pipeline overhead is
    amortized; the caller raises vmem_limit_bytes so the 4x double-buffered
    blocks of the apply pass fit on every TPU generation.
    """
    sub = max(8, 32 // max(itemsize, 1))          # 8 rows (f32) / 16 rows (bf16)
    hw_pad = _round_up(hw, _LANE)
    lane_cap = max(_LANE, min(_MAX_LANE_TILE,
                              (target_bytes // max(sub * itemsize, 1)) // _LANE * _LANE))
    if hw_pad <= lane_cap:
        t = hw_pad                                 # whole spatial extent per block
    else:
        t = None
        for cand in range(lane_cap, _LANE - 1, -_LANE):
            if hw % cand == 0:                     # exact multiple-of-128 divisor
                t = cand
                break
        if t is None:
            t = lane_cap                           # ragged tail: mask in the stats pass
    rows = max(1, target_bytes // (t * itemsize))
    if rows >= nc:
        r = nc                                     # full-dim block (always legal)
    else:
        r = max(sub, rows // sub * sub)
    needs_mask = (hw % t) != 0
    return r, t, needs_mask


def _stats_kernel(x_ref, min_ref, max_ref, *, hw, needs_mask):
    """Per-row (= per (n, c) pair) min/max, accumulated over the hw-tile axis."""
    t = pl.program_id(1)
    x = x_ref[...]                                 # (R, T), stays in input dtype
    if needs_mask:
        tile = x.shape[-1]
        lane = lax.broadcasted_iota(jnp.int32, x.shape, 1) + t * tile
        valid = lane < hw
        big = jnp.array(jnp.inf, dtype=x.dtype)
        x_for_min = jnp.where(valid, x, big)
        x_for_max = jnp.where(valid, x, -big)
    else:
        x_for_min = x
        x_for_max = x
    tmin = jnp.min(x_for_min, axis=-1, keepdims=True).astype(jnp.float32)  # (R, 1)
    tmax = jnp.max(x_for_max, axis=-1, keepdims=True).astype(jnp.float32)

    @pl.when(t == 0)
    def _():
        min_ref[...] = jnp.full_like(min_ref, jnp.inf)
        max_ref[...] = jnp.full_like(max_ref, -jnp.inf)

    min_ref[...] = jnp.minimum(min_ref[...], tmin)
    max_ref[...] = jnp.maximum(max_ref[...], tmax)


def _apply_kernel(p_ref, x_ref, y_ref):
    """Fused quantize; all per-channel params are precomputed in the wrapper."""
    p = p_ref[...]                                 # (R, 5) f32, packed params
    inv_scale = p[:, 0:1]
    scale = p[:, 1:2]
    off = p[:, 2:3]
    lo = p[:, 3:4]
    hi = p[:, 4:5]
    x = x_ref[...].astype(jnp.float32)             # (R, T)
    y = (jnp.round(x * inv_scale + off) - off) * scale
    y_ref[...] = jnp.clip(y, lo, hi).astype(y_ref.dtype)


def _single_pass_kernel(x_ref, y_ref, *, num_bits):
    """Whole tensor resident in VMEM: stats + quantize in one HBM read + write."""
    x = x_ref[...].astype(jnp.float32)             # (N, C, HW)
    min_c = jnp.min(jnp.min(x, axis=-1, keepdims=True), axis=0, keepdims=True)
    max_c = jnp.max(jnp.max(x, axis=-1, keepdims=True), axis=0, keepdims=True)
    posonly = jnp.min(min_c) >= jnp.float32(-0.05)
    max_int = jnp.float32(2 ** num_bits - 1)
    range_pos = max_c - min_c
    range_sym = 2.0 * jnp.maximum(jnp.abs(max_c), jnp.abs(min_c))
    scale = jnp.where(posonly, range_pos, range_sym) / max_int
    inv_scale = jnp.where(scale > 0.0, 1.0 / scale, 0.0)
    lvls = max_int / 2.0
    off = jnp.where(posonly, jnp.float32(0.0), jnp.float32(0.5))
    lo = jnp.where(posonly, jnp.zeros_like(scale), -(lvls - 0.5) * scale)
    hi = jnp.where(posonly, max_int * scale, (lvls - 0.5) * scale)
    y = (jnp.round(x * inv_scale + off) - off) * scale
    y_ref[...] = jnp.clip(y, lo, hi).astype(y_ref.dtype)


def _quant_single_pass(xr, bit):
    kernel = functools.partial(_single_pass_kernel, num_bits=bit)
    return pl.pallas_call(
        kernel,
        out_shape=jax.ShapeDtypeStruct(xr.shape, xr.dtype),
        compiler_params=pltpu.CompilerParams(vmem_limit_bytes=_VMEM_LIMIT_BYTES),
    )(xr)


def quant_per_channel(x, bit=8, *, single_pass_max_bytes=_SINGLE_PASS_MAX_BYTES):
    """JAX/Pallas equivalent of QuantPerChannel.forward. x is NCHW."""
    if bit >= 32:
        return jnp.maximum(x, 0.0)                 # reference: x.clamp(min=0.0)

    assert x.ndim == 4, "QuantPerChannel expects NCHW input"
    N, C, H, W = x.shape
    HW = H * W
    NC = N * C
    itemsize = jnp.dtype(x.dtype).itemsize

    # Small tensors: 2 HBM passes instead of 3.
    if x.size * 4 <= single_pass_max_bytes:
        yr = _quant_single_pass(x.reshape(N, C, HW), bit)
        return yr.reshape(N, C, H, W)

    # ---- two-pass tiled path over the (N*C, H*W) view (a free reshape) ----
    xr = x.reshape(NC, HW)
    R, T, needs_mask = _pick_tiles(NC, HW, itemsize)
    grid = (pl.cdiv(NC, R), pl.cdiv(HW, T))

    x_spec = pl.BlockSpec((R, T), lambda r, t: (r, t))
    stat_spec = pl.BlockSpec((R, 1), lambda r, t: (r, 0))

    # pass 1: per-row min/max (row axis parallel, hw-tile axis is the reduction)
    stats_kernel = functools.partial(_stats_kernel, hw=HW, needs_mask=needs_mask)
    min_nc, max_nc = pl.pallas_call(
        stats_kernel,
        out_shape=(jax.ShapeDtypeStruct((NC, 1), jnp.float32),
                   jax.ShapeDtypeStruct((NC, 1), jnp.float32)),
        grid=grid,
        in_specs=[x_spec],
        out_specs=(stat_spec, stat_spec),
        compiler_params=pltpu.CompilerParams(
            dimension_semantics=("parallel", "arbitrary"),
            vmem_limit_bytes=_VMEM_LIMIT_BYTES),
        cost_estimate=pl.CostEstimate(
            flops=2 * x.size, transcendentals=0,
            bytes_accessed=x.size * itemsize + 2 * NC * 4),
    )(xr)

    # Tiny wrapper-side jnp on (C,) arrays: fold over N, derive quant params
    # once (hoisted out of the per-step apply kernel).
    min_c = jnp.min(min_nc.reshape(N, C), axis=0)
    max_c = jnp.max(max_nc.reshape(N, C), axis=0)
    posonly = jnp.min(min_c) >= jnp.float32(-0.05)
    max_int = jnp.float32(2 ** bit - 1)
    range_pos = max_c - min_c
    range_sym = 2.0 * jnp.maximum(jnp.abs(max_c), jnp.abs(min_c))
    scale = jnp.where(posonly, range_pos, range_sym) / max_int
    inv_scale = jnp.where(scale > 0.0, 1.0 / scale, 0.0)  # exact recip on (C,)
    lvls = max_int / 2.0
    off = jnp.where(posonly, jnp.float32(0.0), jnp.float32(0.5))
    lo = jnp.where(posonly, jnp.zeros_like(scale), -(lvls - 0.5) * scale)
    hi = jnp.where(posonly, max_int * scale, (lvls - 0.5) * scale)
    params_c = jnp.stack(
        [inv_scale, scale, jnp.broadcast_to(off, scale.shape), lo, hi], axis=-1)
    params = jnp.broadcast_to(params_c[None], (N, C, 5)).reshape(NC, 5)
    params = params.astype(jnp.float32)

    param_spec = pl.BlockSpec((R, 5), lambda r, t: (r, 0))

    # pass 2: fused quantize, all grid axes independent.
    yr = pl.pallas_call(
        _apply_kernel,
        out_shape=jax.ShapeDtypeStruct((NC, HW), x.dtype),
        grid=grid,
        in_specs=[param_spec, x_spec],
        out_specs=pl.BlockSpec((R, T), lambda r, t: (r, t)),
        compiler_params=pltpu.CompilerParams(
            dimension_semantics=("parallel", "parallel"),
            vmem_limit_bytes=_VMEM_LIMIT_BYTES),
        cost_estimate=pl.CostEstimate(
            flops=6 * x.size, transcendentals=0,
            bytes_accessed=2 * x.size * itemsize + NC * 5 * 4),
    )(params, xr)

    return yr.reshape(N, C, H, W)


def _quant_per_channel_ref(x, num_bits=8):
    """Pure-jnp reference mirroring the PyTorch forward.

    Uses the same reciprocal-multiply formulation as the kernel (x * (1/scale)
    instead of x / scale); scale==0 channels return 0 rather than NaN (documented
    deviation).
    """
    min_c = jnp.min(x, axis=(0, 2, 3), keepdims=True)
    max_c = jnp.max(x, axis=(0, 2, 3), keepdims=True)
    posonly = jnp.min(x) >= -0.05
    max_int = jnp.float32(2 ** num_bits - 1)
    range_pos = max_c - min_c
    range_sym = 2.0 * jnp.maximum(jnp.abs(max_c), jnp.abs(min_c))
    scale = jnp.where(posonly, range_pos, range_sym) / max_int
    inv_scale = jnp.where(scale > 0.0, 1.0 / scale, 0.0)
    lvls = max_int / 2.0
    off = jnp.where(posonly, 0.0, 0.5)
    lo = jnp.where(posonly, jnp.zeros_like(scale), -(lvls - 0.5) * scale)
    hi = jnp.where(posonly, max_int * scale, (lvls - 0.5) * scale)
    y = (jnp.round(x * inv_scale + off) - off) * scale
    return jnp.clip(y, lo, hi)


if __name__ == "__main__":
    key = jax.random.PRNGKey(0)
    k1, k2, k3 = jax.random.split(key, 3)
    bit = 8  # QuantPerChannel(bit=8), as in the module's __init__.

    # Case 1: mixed-sign input -> symmetric branch, fits-in-VMEM single-pass path.
    x = jax.random.normal(k1, (2, 4, 16, 16), dtype=jnp.float32)
    y = jax.block_until_ready(quant_per_channel(x, bit=bit))
    y_ref = _quant_per_channel_ref(x, num_bits=bit)
    assert y.shape == x.shape and y.dtype == x.dtype
    assert jnp.allclose(y, y_ref, atol=1e-6, rtol=0.0), "mismatch (single-pass, symmetric)"

    # Case 2: positive-only input -> posonly branch, forced two-pass tiled path.
    x_pos = jnp.abs(jax.random.normal(k2, (2, 4, 16, 16), dtype=jnp.float32))
    y_pos = jax.block_until_ready(
        quant_per_channel(x_pos, bit=bit, single_pass_max_bytes=0))
    y_pos_ref = _quant_per_channel_ref(x_pos, num_bits=bit)
    assert jnp.allclose(y_pos, y_pos_ref, atol=1e-6, rtol=0.0), "mismatch (two-pass, posonly)"

    # Case 3: ragged spatial size (14x14 -> HW=196, no multiple-of-128 divisor):
    # two-pass path with lane masking in the stats pass.
    x_rag = jax.random.normal(k3, (2, 4, 14, 14), dtype=jnp.float32)
    y_rag = jax.block_until_ready(
        quant_per_channel(x_rag, bit=bit, single_pass_max_bytes=0))
    y_rag_ref = _quant_per_channel_ref(x_rag, num_bits=bit)
    assert jnp.allclose(y_rag, y_rag_ref, atol=1e-6, rtol=0.0), "mismatch (two-pass, ragged HW)"

    # Case 4: bit >= 32 path (pure clamp, no quantization).
    y32 = jax.block_until_ready(quant_per_channel(x, bit=32))
    assert jnp.allclose(y32, jnp.maximum(x, 0.0)), "mismatch (bit>=32 path)"

    print("KERNEL_OK")
</pallas_src>

<mosaic_0001>
module attributes {stable_mosaic.version = 11 : i64} {
  func.func @_single_pass_kernel(%arg0: memref<2x4x256xf32, #tpu.memory_space<vmem>>, %arg1: memref<2x4x256xf32, #tpu.memory_space<vmem>>) attributes {dimension_semantics = [], scalar_prefetch = 0 : i64, scratch_operands = 0 : i64, tpu.core_type = #tpu.core_type<tc>} {
    %c0 = arith.constant 0 : index
    %c0_0 = arith.constant 0 : index
    %c0_1 = arith.constant 0 : index
    %0 = vector.load %arg0[%c0, %c0_0, %c0_1] : memref<2x4x256xf32, #tpu.memory_space<vmem>>, vector<2x4x256xf32>
    %cst = arith.constant dense<0x7F800000> : vector<2x4xf32>
    %1 = vector.multi_reduction <minimumf>, %0, %cst [2] : vector<2x4x256xf32> to vector<2x4xf32>
    %2 = vector.shape_cast %1 : vector<2x4xf32> to vector<2x4x1xf32>
    %cst_2 = arith.constant dense<0x7F800000> : vector<4x1xf32>
    %3 = vector.multi_reduction <minimumf>, %2, %cst_2 [0] : vector<2x4x1xf32> to vector<4x1xf32>
    %4 = vector.shape_cast %3 : vector<4x1xf32> to vector<1x4x1xf32>
    %cst_3 = arith.constant dense<0xFF800000> : vector<2x4xf32>
    %5 = vector.multi_reduction <maximumf>, %0, %cst_3 [2] : vector<2x4x256xf32> to vector<2x4xf32>
    %6 = vector.shape_cast %5 : vector<2x4xf32> to vector<2x4x1xf32>
    %cst_4 = arith.constant dense<0xFF800000> : vector<4x1xf32>
    %7 = vector.multi_reduction <maximumf>, %6, %cst_4 [0] : vector<2x4x1xf32> to vector<4x1xf32>
    %8 = vector.shape_cast %7 : vector<4x1xf32> to vector<1x4x1xf32>
    %9 = vector.shape_cast %4 : vector<1x4x1xf32> to vector<1x1x4x1xf32>
    %cst_5 = arith.constant dense<0x7F800000> : vector<1xf32>
    %10 = vector.multi_reduction <minimumf>, %9, %cst_5 [1, 2, 3] : vector<1x1x4x1xf32> to vector<1xf32>
    %11 = vector.shape_cast %10 : vector<1xf32> to vector<1x1x1x1xf32>
    %12 = vector.extract %11[0, 0, 0, 0] : f32 from vector<1x1x1x1xf32>
    %cst_6 = arith.constant -5.000000e-02 : f32
    %13 = arith.cmpf oge, %12, %cst_6 : f32
    %14 = arith.subf %8, %4 : vector<1x4x1xf32>
    %15 = math.absf %8 : vector<1x4x1xf32>
    %16 = math.absf %4 : vector<1x4x1xf32>
    %17 = arith.maximumf %15, %16 : vector<1x4x1xf32>
    %cst_7 = arith.constant 2.000000e+00 : f32
    %18 = vector.broadcast %cst_7 : f32 to vector<1x4x1xf32>
    %19 = arith.mulf %18, %17 : vector<1x4x1xf32>
    %20 = arith.select %13, %14, %19 : vector<1x4x1xf32>
    %cst_8 = arith.constant 2.550000e+02 : f32
    %21 = vector.broadcast %cst_8 : f32 to vector<1x4x1xf32>
    %22 = arith.divf %20, %21 : vector<1x4x1xf32>
    %cst_9 = arith.constant 0.000000e+00 : f32
    %23 = vector.broadcast %cst_9 : f32 to vector<1x4x1xf32>
    %24 = arith.cmpf ogt, %22, %23 : vector<1x4x1xf32>
    %cst_10 = arith.constant 1.000000e+00 : f32
    %25 = vector.broadcast %cst_10 : f32 to vector<1x4x1xf32>
    %26 = arith.divf %25, %22 : vector<1x4x1xf32>
    %cst_11 = arith.constant 0.000000e+00 : f32
    %27 = vector.broadcast %cst_11 : f32 to vector<1x4x1xf32>
    %28 = arith.select %24, %26, %27 : vector<1x4x1xi1>, vector<1x4x1xf32>
    %cst_12 = arith.constant 2.550000e+02 : f32
    %cst_13 = arith.constant 2.000000e+00 : f32
    %29 = arith.divf %cst_12, %cst_13 : f32
    %cst_14 = arith.constant 0.000000e+00 : f32
    %cst_15 = arith.constant 5.000000e-01 : f32
    %30 = arith.select %13, %cst_14, %cst_15 : f32
    %cst_16 = arith.constant 0.000000e+00 : f32
    %31 = vector.broadcast %cst_16 : f32 to vector<1x4x1xf32>
    %cst_17 = arith.constant 5.000000e-01 : f32
    %32 = arith.subf %29, %cst_17 : f32
    %cst_18 = arith.constant 0.000000e+00 : f32
    %33 = arith.subf %cst_18, %32 : f32
    %34 = vector.broadcast %33 : f32 to vector<1x4x1xf32>
    %35 = arith.mulf %34, %22 : vector<1x4x1xf32>
    %36 = arith.select %13, %31, %35 : vector<1x4x1xf32>
    %cst_19 = arith.constant 2.550000e+02 : f32
    %37 = vector.broadcast %cst_19 : f32 to vector<1x4x1xf32>
    %38 = arith.mulf %37, %22 : vector<1x4x1xf32>
    %cst_20 = arith.constant 5.000000e-01 : f32
    %39 = arith.subf %29, %cst_20 : f32
    %40 = vector.broadcast %39 : f32 to vector<1x4x1xf32>
    %41 = arith.mulf %40, %22 : vector<1x4x1xf32>
    %42 = arith.select %13, %38, %41 : vector<1x4x1xf32>
    %43 = vector.broadcast %28 : vector<1x4x1xf32> to vector<2x4x256xf32>
    %44 = arith.mulf %0, %43 : vector<2x4x256xf32>
    %45 = vector.broadcast %30 : f32 to vector<2x4x256xf32>
    %46 = arith.addf %44, %45 : vector<2x4x256xf32>
    %47 = math.roundeven %46 : vector<2x4x256xf32>
    %48 = vector.broadcast %30 : f32 to vector<2x4x256xf32>
    %49 = arith.subf %47, %48 : vector<2x4x256xf32>
    %50 = vector.broadcast %22 : vector<1x4x1xf32> to vector<2x4x256xf32>
    %51 = arith.mulf %49, %50 : vector<2x4x256xf32>
    %52 = vector.broadcast %36 : vector<1x4x1xf32> to vector<2x4x256xf32>
    %53 = arith.maximumf %52, %51 : vector<2x4x256xf32>
    %54 = vector.broadcast %42 : vector<1x4x1xf32> to vector<2x4x256xf32>
    %55 = arith.minimumf %54, %53 : vector<2x4x256xf32>
    %c0_21 = arith.constant 0 : index
    %c0_22 = arith.constant 0 : index
    %c0_23 = arith.constant 0 : index
    %56 = vector.load %arg1[%c0_21, %c0_22, %c0_23] : memref<2x4x256xf32, #tpu.memory_space<vmem>>, vector<2x4x256xf32>
    tpu.vector_store %arg1[%c0_21, %c0_22, %c0_23], %55 {strides = array<i32>} : memref<2x4x256xf32, #tpu.memory_space<vmem>>, vector<2x4x256xf32>,
    return
  }
}

</mosaic_0001>

<bundles_post_ra>
// kernel: tpu_custom_call.1
= control target key start
LH: loop header
LB: loop body
LE: loop exit
PB: predicated region body
PF: predicated region fallthrough
CT: control target
= control target key end

     0   :  { %6 = vsyncpa [#allocation3], 0  ;;  %s289_s0 = inlined_call_operand.hbm [shape: f32[2,4,256], index: 0, kind: input, shape index: {}]   ;;  %s290_s1 = inlined_call_operand.hbm [shape: f32[2,4,256], index: 1, kind: output, shape index: {}]  }
   0x1   :  { %7 = vsyncpa [#allocation4], 0  ;;  %s219_s6 = smov [#allocation2]   ;;  %s171_s10 = scalar_lea.hbm %s289_s0, 256 }
   0x2   :  { %s13_s7 = sshll.u32 %s219_s6, 4  ;;  %p172_p0 = scmp.ne.s32.totalorder %s289_s0, %s171_s10  ;;  %s14_s7 = int_to_ptr.vmem [resolvable:$true] %s13_s7 }
   0x3   :  { %p175_p1 = scmp.lt.u32.totalorder %s171_s10, %s289_s0 }
   0x5   :  { %p177_p2 = pnand %p175_p1, %p172_p0 }
   0x7   :  { %180 = shalt.err (!%p177_p2)
}
   0x8   :  { %s181_s15 = scalar_lea.vmem %s14_s7, 256  ;;  %p186_p4 = scmp.lt.s32.totalorder %s14_s7, %s14_s7 }
   0x9   :  { %p182_p3 = scmp.ne.s32.totalorder %s14_s7, %s181_s15  ;;  %p187_p5 = scmp.lt.s32.totalorder %s181_s15, %s181_s15 }
   0xb   :  { %p188_p6 = por %p187_p5, %p186_p4 }
   0xd   :  { %p189_p7 = pnand %p188_p6, %p182_p3 }
   0xf   :  { %192 = shalt.err (!%p189_p7)
}
  0x10   :  { %s220_s16 = smov 128   ;;  %s221_s17 = smov 8  }
  0x11   :  { %19 = dma.hbm_to_vmem [thread:$0]  %s289_s0, 256, %s14_s7, [#allocation3], %s220_s16, %s220_s16, %s221_s17  }
  0x12   :  { %215 = dma.done.wait [#allocation3], 256  }
  0x13   :  { %216 = vsyncadd [#allocation3], 4294967040  ;;  %vm31_vm0 = vcmask 1043456   ;;  %v23_v0 = vld [vmem:[#allocation2] sm:$0xff]  ;;  %v24_v1 = vld [vmem:[#allocation2 + $0x8] sm:$0xff]  ;;  %v92_v44 = vlaneseq  ;;  %s223_s22 = smov [#allocation5]  }
  0x14   :  { %v27_v2 = vcombine.high %v23_v0, %v23_v0  ;;  %v45_v3 = vsel %vm31_vm0, %v23_v0, -inf  ;;  %v32_v4 = vsel %vm31_vm0, %v23_v0, inf  ;;  %v28_v5 = vcombine.high %v24_v1, %v24_v1  ;;  %s146_s23 = sshll.u32 %s223_s22, 4  ;;  %s147_s23 = int_to_ptr.vmem [resolvable:$true] %s146_s23 }
  0x15   :  { %v50_v6 = vsel %vm31_vm0, %v24_v1, -inf  ;;  %v37_v7 = vsel %vm31_vm0, %v24_v1, inf  ;;  %v222_v42 = vmov 839922192   ;;  %v93_v46 = vshrl.u32 %v92_v44, 7  ;;  %s193_s24 = scalar_lea.vmem %s147_s23, 256  ;;  %p198_p10 = scmp.lt.s32.totalorder %s147_s23, %s147_s23 }
  0x16   :  { %v46_v8 = vsel %vm31_vm0, %v27_v2, -inf  ;;  %v33_v9 = vsel %vm31_vm0, %v27_v2, inf  ;;  %v51_v10 = vsel %vm31_vm0, %v28_v5, -inf  ;;  %v38_v11 = vsel %vm31_vm0, %v28_v5, inf  ;;  %p194_p9 = scmp.ne.s32.totalorder %s147_s23, %s193_s24  ;;  %p199_p11 = scmp.lt.s32.totalorder %s193_s24, %s193_s24 }
  0x17   :  { %v47_v12 = vmax.f32 %v45_v3, %v46_v8  ;;  %v34_v13 = vmin.f32 %v32_v4, %v33_v9  ;;  %v52_v14 = vmax.f32 %v50_v6, %v51_v10  ;;  %v39_v15 = vmin.f32 %v37_v7, %v38_v11 }
  0x18   :  { %v90_v43 = vunpack.c.l.s4 %v222_v42  ;;  %p200_p12 = por %p199_p11, %p198_p10 }
  0x19   :  { %48 = vmax.xlane.f32.xlu1 %v47_v12  ;;  %35 = vmin.xlane.f32.xlu0 %v34_v13 }
  0x1a   :  { %v91_v45 = vunpack.c.0.s8 %v90_v43  ;;  %p201_p13 = pnand %p200_p12, %p194_p9 }
  0x1c   :  { %v94_v48 = vsub.s32 %v91_v45, %v93_v46 }
  0x1d   :  { %53 = vmax.xlane.f32.xlu1 %v52_v14  ;;  %40 = vmin.xlane.f32.xlu0 %v39_v15 }
  0xa6   :  { %v36_v16 = vpop.xlane.xlu0 %35  ;;  %v49_v28 = vpop.xlane.xlu1 %48 }
  0xa7   :  { %v42_v18 = vsel %vm31_vm0, %v36_v16, inf  ;;  %v55_v30 = vsel %vm31_vm0, %v49_v28, -inf }
  0xaa   :  { %v41_v17 = vpop.xlane.xlu0 %40  ;;  %v54_v29 = vpop.xlane.xlu1 %53 }
  0xab   :  { %v43_v19 = vsel %vm31_vm0, %v41_v17, inf  ;;  %v56_v31 = vsel %vm31_vm0, %v54_v29, -inf }
  0xac   :  { %v44_v20 = vmin.f32 %v42_v18, %v43_v19  ;;  %v57_v32 = vmax.f32 %v55_v30, %v56_v31 }
  0xae   :  { %v58_v21 = vsel %vm31_vm0, %v44_v20, inf  ;;  %v68_v33 = vand.u32 2147483647, %v57_v32  ;;  %v69_v34 = vand.u32 2147483647, %v44_v20  ;;  %v67_v36 = vsub.f32 %v57_v32, %v44_v20 }
  0xaf   :  { %v59_v22 = vrot.slane %v58_v21, 4 }
  0xb0   :  { %v70_v35 = vmax.f32.f32 %v68_v33, %v69_v34 }
  0xb1   :  { %v60_v23 = vmin.f32 %v58_v21, %v59_v22 }
  0xb2   :  { %v71_v37 = vmul.f32 2.0, %v70_v35 }
  0xb3   :  { %v61_v24 = vrot.slane %v60_v23, 2 }
  0xb5   :  { %v62_v25 = vmin.f32 %v60_v23, %v61_v24 }
  0xb7   :  { %v63_v26 = vrot.slane %v62_v25, 1 }
  0xb9   :  { %v64_v27 = vmin.f32 %v62_v25, %v63_v26 }
  0xbb   :  { %158 = vpush %v64_v27 }
  0xec   :  { %s159_s0 = spop %158 }
  0xed   :  { %p66_p8 = scmp.ge.f32.partialorder %s159_s0, -0.05 }
  0xef   :  { %s72_s20 = scalar_select %p66_p8, 1, 0 }
  0xf0   :  { %s82_s21 = scalar_select %p66_p8, 0.0, 0.5 }
  0xf1   :  { %v73_v38 = vstv %s72_s20 }
  0xf2   :  { %vm263_vm1 = vcmp.eq.s32.totalorder %v73_v38, 1  ;;  %v99_v53 = vstv %s82_s21 }
  0xf3   :  { %v75_v40 = vsel %vm263_vm1, %v67_v36, %v71_v37 }
  0xf4   :  { %v77_v41 = vmul.f32 0.003921569, %v75_v40 }
  0xf6   :  { %169 = vrcp.f32 %v77_v41  ;;  %vm78_vm2 = vcmp.gt.f32.partialorder %v77_v41, 0.0  ;;  %v83_v58 = vmul.f32 -127.0, %v77_v41  ;;  %v113_v61 = vrot.slane %v77_v41, %v94_v48 }
  0xf7   :  { %v85_v3 = vmul.f32 255.0, %v77_v41  ;;  %v86_v4 = vmul.f32 127.0, %v77_v41 }
  0xf8   :  { %v84_v2 = vsel %vm263_vm1, 0.0, %v83_v58 }
  0xf9   :  { %v87_v9 = vsel %vm263_vm1, %v85_v3, %v86_v4 }
 0x100   :  { %v170_v47 = vpop.eup %169 }
 0x101   :  { %v81_v49 = vsel %vm78_vm2, %v170_v47, 0.0 }
 0x102   :  { %v95_v50 = vrot.slane %v81_v49, %v94_v48 }
 0x104   :  { %v97_v51 = vmul.f32 %v95_v50, %v23_v0  ;;  %v98_v52 = vmul.f32 %v95_v50, %v24_v1 }
 0x106   :  { %v100_v54 = vadd.f32 %v99_v53, %v97_v51  ;;  %v101_v55 = vadd.f32 %v99_v53, %v98_v52 }
 0x108   :  { %v160_v56 = vround.rtne.f32 %v100_v54  ;;  %v161_v57 = vround.rtne.f32 %v101_v55 }
 0x10a   :  { %v104_v59 = vsub.f32 %v160_v56, %v99_v53  ;;  %v105_v60 = vsub.f32 %v161_v57, %v99_v53 }
 0x10c   :  { %v115_v62 = vmul.f32 %v113_v61, %v104_v59  ;;  %v116_v63 = vmul.f32 %v113_v61, %v105_v60 }
 0x10e   :  { %v119_v5 = vcombine.high %v115_v62, %v115_v62  ;;  %v120_v6 = vcombine.high %v116_v63, %v116_v63  ;;  %v123_v0 = vmax.f32 %v84_v2, %v115_v62  ;;  %v125_v1 = vmax.f32 %v84_v2, %v116_v63 }
 0x110   :  { %v124_v7 = vmax.f32 %v84_v2, %v119_v5  ;;  %v126_v8 = vmax.f32 %v84_v2, %v120_v6  ;;  %v127_v10 = vmin.f32 %v87_v9, %v123_v0  ;;  %v129_v12 = vmin.f32 %v87_v9, %v125_v1 }
 0x112   :  { %v128_v11 = vmin.f32 %v87_v9, %v124_v7  ;;  %v130_v13 = vmin.f32 %v87_v9, %v126_v8 }
 0x114   :  { %v135_v14 = vcombine.low %v127_v10, %v128_v11  ;;  %v136_v15 = vcombine.low %v129_v12, %v130_v13 }
 0x116   :  { %139 = vst [vmem:[#allocation5] sm:$0xff] %v135_v14  ;;  %140 = vst [vmem:[#allocation5 + $0x8] sm:$0xff] %v136_v15 }
 0x117   :  { %204 = shalt.err (!%p201_p13)
}
 0x118   :  { %s205_s27 = scalar_lea.hbm %s290_s1, 256 }
 0x119   :  { %p206_p0 = scmp.ne.s32.totalorder %s290_s1, %s205_s27  ;;  %p209_p1 = scmp.lt.u32.totalorder %s205_s27, %s290_s1 }
 0x11b   :  { %p211_p2 = pnand %p209_p1, %p206_p0 }
 0x11d   :  { %214 = shalt.err (!%p211_p2)
}
 0x11e   :  { %152 = dma.vmem_to_hbm [thread:$0]  %s147_s23, 256, %s290_s1, [#allocation4], %s220_s16, %s220_s16, %s221_s17  }
 0x11f   :  { %217 = dma.done.wait [#allocation4], 256  }
 0x120   :  { %218 = vsyncadd [#allocation4], 4294967040 }
 0x121   :  { %156 = vsyncpa [#allocation3], 1 }
 0x122   :  { %157 = vsyncpa [#allocation4], 1 }

</bundles_post_ra>
